<compile_context>
chip_gen: v7x
topology: tpu7x:2x2x1
jax: 0.10.0
libtpu: 0.0.40
codegen_flags: <defaults>
</compile_context>

<pallas_src>
import jax
import jax.numpy as jnp
from jax import lax
from jax.experimental import pallas as pl
from jax.experimental.pallas import tpu as pltpu


# -----------------------------------------------------------------------------
# Fused Pallas kernel: whole extension branch + main branch for one image.
# -----------------------------------------------------------------------------
def fused_downsample_kernel(p_ref, w1_ref, w2_ref, w3_ref,
                            s1_ref, b1_ref, s2_ref, b2_ref, s3_ref, b3_ref,
                            o_ref, e1pad_ref):
    """
    p_ref     : (H2, W2, 4*Cin)   space-to-depth patches (also the 4 pool taps)
    w1_ref    : (4*Cin, Cint)     ext1 2x2/s2 conv as GEMM weights
    w2_ref    : (9*Cint, Cint)    ext2 3x3 conv, rows ordered (kh, kw, cin)
    w3_ref    : (Cint, Cout)      ext3 1x1 conv weights
    s*_ / b*_ : (1, C)            folded (eval-mode) BatchNorm scale / shift
    o_ref     : (H2, W2, Cout)    output block
    e1pad_ref : (H2+2, W2+2, Cint) VMEM scratch; zero halo == 3x3 conv pad=1
    """
    H2, W2, Cout = o_ref.shape
    Cin = p_ref.shape[-1] // 4
    Cint = w1_ref.shape[-1]
    M = H2 * W2

    patches = p_ref[...]                          # (H2, W2, 4*Cin)
    p2d = patches.reshape(M, 4 * Cin)             # rows = output pixels

    # ---- ext1: 2x2 stride-2 conv (GEMM) + BN + ReLU --------------------------
    e1 = jnp.dot(p2d, w1_ref[...], preferred_element_type=jnp.float32)
    e1 = jnp.maximum(e1 * s1_ref[...] + b1_ref[...], 0.0)            # (M, Cint)

    # Stash into zero-padded VMEM scratch; the untouched halo stays zero and is
    # the 3x3 conv's padding=1.  Re-zeroed every step so this is also correct
    # when the batch grid is sharded across TensorCores.
    e1pad_ref[...] = jnp.zeros_like(e1pad_ref)
    e1pad_ref[1:H2 + 1, 1:W2 + 1, :] = e1.reshape(H2, W2, Cint)

    # ---- ext2: 3x3 pad-1 conv as 9 shifted GEMMs + BN + ReLU -----------------
    acc = jnp.zeros((M, Cint), jnp.float32)
    for kh in range(3):
        for kw in range(3):
            win = e1pad_ref[kh:kh + H2, kw:kw + W2, :].reshape(M, Cint)
            tap = w2_ref[(kh * 3 + kw) * Cint:(kh * 3 + kw + 1) * Cint, :]
            acc = acc + jnp.dot(win, tap, preferred_element_type=jnp.float32)
    e2 = jnp.maximum(acc * s2_ref[...] + b2_ref[...], 0.0)           # (M, Cint)

    # ---- ext3: 1x1 conv (GEMM) + BN + ReLU -----------------------------------
    e3 = jnp.dot(e2, w3_ref[...], preferred_element_type=jnp.float32)
    ext = jnp.maximum(e3 * s3_ref[...] + b3_ref[...], 0.0)           # (M, Cout)

    # ---- main branch: 2x2 max-pool straight from the space-to-depth taps -----
    main = jnp.maximum(
        jnp.maximum(p2d[:, 0 * Cin:1 * Cin], p2d[:, 1 * Cin:2 * Cin]),
        jnp.maximum(p2d[:, 2 * Cin:3 * Cin], p2d[:, 3 * Cin:4 * Cin]))
    if Cout > Cin:  # zero channel-pad == torch.cat([main, zeros], dim=1)
        main = jnp.concatenate(
            [main, jnp.zeros((M, Cout - Cin), jnp.float32)], axis=-1)

    # ---- residual add + output ReLU, single full-block store -----------------
    out = jnp.maximum(ext + main, 0.0)
    o_ref[...] = out.reshape(H2, W2, Cout).astype(o_ref.dtype)


# -----------------------------------------------------------------------------
# Host wrapper: one pallas_call, weights resident in VMEM, batch axis parallel.
# -----------------------------------------------------------------------------
@jax.jit
def downsample_bottleneck(x_nhwc, params):
    w1, w2, w3 = params["w1"], params["w2"], params["w3"]
    Cin, Cint = w1.shape[2], w1.shape[3]          # static (from array shapes)
    Cout = w3.shape[3]
    N, H, W, _ = x_nhwc.shape
    H2, W2 = H // 2, W // 2

    # Single host-side glue op: 2x2 space-to-depth (feeds ext1 GEMM + max-pool).
    patches = (x_nhwc.reshape(N, H2, 2, W2, 2, Cin)
               .transpose(0, 1, 3, 2, 4, 5)
               .reshape(N, H2, W2, 4 * Cin))

    w1_mat = w1.reshape(4 * Cin, Cint)            # (kh, kw, cin) -> rows
    w2_mat = w2.reshape(9 * Cint, Cint)           # (kh, kw, cin) -> rows
    w3_mat = w3.reshape(Cint, Cout)

    m_total = N * H2 * W2
    flops = 2 * m_total * (4 * Cin * Cint + 9 * Cint * Cint + Cint * Cout)
    bytes_accessed = 4 * (patches.size + w1_mat.size + w2_mat.size + w3_mat.size
                          + 2 * (2 * Cint + Cout) + m_total * Cout)

    resident2 = lambda n: (0, 0)                  # weights/BN stay VMEM-resident

    return pl.pallas_call(
        fused_downsample_kernel,
        out_shape=jax.ShapeDtypeStruct((N, H2, W2, Cout), x_nhwc.dtype),
        grid=(N,),
        in_specs=[
            pl.BlockSpec((None, H2, W2, 4 * Cin), lambda n: (n, 0, 0, 0)),
            pl.BlockSpec((4 * Cin, Cint), resident2),
            pl.BlockSpec((9 * Cint, Cint), resident2),
            pl.BlockSpec((Cint, Cout), resident2),
            pl.BlockSpec((1, Cint), resident2),
            pl.BlockSpec((1, Cint), resident2),
            pl.BlockSpec((1, Cint), resident2),
            pl.BlockSpec((1, Cint), resident2),
            pl.BlockSpec((1, Cout), resident2),
            pl.BlockSpec((1, Cout), resident2),
        ],
        out_specs=pl.BlockSpec((None, H2, W2, Cout), lambda n: (n, 0, 0, 0)),
        scratch_shapes=[pltpu.VMEM((H2 + 2, W2 + 2, Cint), jnp.float32)],
        compiler_params=pltpu.CompilerParams(
            dimension_semantics=("parallel",),        # shard batch over TCs (v7x)
            vmem_limit_bytes=32 * 1024 * 1024),       # safe on v5e/v6e/v7x
        cost_estimate=pl.CostEstimate(flops=flops, transcendentals=0,
                                      bytes_accessed=bytes_accessed),
    )(patches, w1_mat, w2_mat, w3_mat,
      params["s1"], params["b1"], params["s2"], params["b2"],
      params["s3"], params["b3"])


# -----------------------------------------------------------------------------
# Parameter construction (arrays only -- channel counts come from array shapes)
# -----------------------------------------------------------------------------
def init_params(key, in_ch, out_ch, internal_ratio=4):
    int_ch = in_ch // internal_ratio
    ks = jax.random.split(key, 6)

    def bn(k, c):
        g = 1.0 + 0.1 * jax.random.normal(k, (c,), jnp.float32)
        b = 0.05 * jnp.arange(c, dtype=jnp.float32)
        mean = 0.1 * jax.random.normal(jax.random.fold_in(k, 1), (c,), jnp.float32)
        var = jnp.abs(jax.random.normal(jax.random.fold_in(k, 2), (c,), jnp.float32)) + 0.5
        eps = 1e-5
        scale = g / jnp.sqrt(var + eps)
        shift = b - mean * scale
        return scale.reshape(1, c), shift.reshape(1, c)

    # conv weights kept in HWIO layout
    w1 = 0.2 * jax.random.normal(ks[0], (2, 2, in_ch, int_ch), jnp.float32)
    w2 = 0.2 * jax.random.normal(ks[1], (3, 3, int_ch, int_ch), jnp.float32)
    w3 = 0.2 * jax.random.normal(ks[2], (1, 1, int_ch, out_ch), jnp.float32)
    s1, b1 = bn(ks[3], int_ch)
    s2, b2 = bn(ks[4], int_ch)
    s3, b3 = bn(ks[5], out_ch)
    return dict(w1=w1, w2=w2, w3=w3, s1=s1, b1=b1, s2=s2, b2=b2, s3=s3, b3=b3)


# -----------------------------------------------------------------------------
# Pure-JAX reference (eval-mode semantics) for a correctness check
# -----------------------------------------------------------------------------
def reference_forward(x_nhwc, params):
    dn = ("NHWC", "HWIO", "NHWC")
    hp = lax.Precision.HIGHEST
    Cin = params["w1"].shape[2]
    Cout = params["w3"].shape[3]
    main = lax.reduce_window(x_nhwc, -jnp.inf, lax.max,
                             (1, 2, 2, 1), (1, 2, 2, 1), "VALID")
    e = lax.conv_general_dilated(x_nhwc, params["w1"], (2, 2), "VALID",
                                 dimension_numbers=dn, precision=hp)
    e = jnp.maximum(e * params["s1"].reshape(1, 1, 1, -1) + params["b1"].reshape(1, 1, 1, -1), 0.0)
    e = lax.conv_general_dilated(e, params["w2"], (1, 1), "SAME",
                                 dimension_numbers=dn, precision=hp)
    e = jnp.maximum(e * params["s2"].reshape(1, 1, 1, -1) + params["b2"].reshape(1, 1, 1, -1), 0.0)
    e = lax.conv_general_dilated(e, params["w3"], (1, 1), "VALID",
                                 dimension_numbers=dn, precision=hp)
    e = jnp.maximum(e * params["s3"].reshape(1, 1, 1, -1) + params["b3"].reshape(1, 1, 1, -1), 0.0)
    main = jnp.pad(main, ((0, 0), (0, 0), (0, 0), (0, Cout - Cin)))
    return jnp.maximum(main + e, 0.0)


# -----------------------------------------------------------------------------
if __name__ == "__main__":
    N, Cin, H, W = 2, 8, 16, 16      # NCHW view of the input (PyTorch convention)
    Cout = 16
    key = jax.random.PRNGKey(0)
    kx, kp = jax.random.split(key)

    x_nchw = jax.random.normal(kx, (N, Cin, H, W), jnp.float32)
    x_nhwc = jnp.transpose(x_nchw, (0, 2, 3, 1))

    params = init_params(kp, Cin, Cout, internal_ratio=4)

    out = downsample_bottleneck(x_nhwc, params)
    out = jax.block_until_ready(out)

    ref = reference_forward(x_nhwc, params)
    assert out.shape == (N, H // 2, W // 2, Cout)
    assert jnp.allclose(out, ref, atol=2e-3, rtol=2e-3), \
        float(jnp.max(jnp.abs(out - ref)))

    print("KERNEL_OK")
</pallas_src>

<mosaic_0001>
module attributes {stable_mosaic.version = 11 : i64} {
  func.func @fused_downsample_kernel(%arg0: i32, %arg1: memref<1x8x8x32xf32, #tpu.memory_space<vmem>>, %arg2: memref<32x2xf32, #tpu.memory_space<vmem>>, %arg3: memref<18x2xf32, #tpu.memory_space<vmem>>, %arg4: memref<2x16xf32, #tpu.memory_space<vmem>>, %arg5: memref<1x2xf32, #tpu.memory_space<vmem>>, %arg6: memref<1x2xf32, #tpu.memory_space<vmem>>, %arg7: memref<1x2xf32, #tpu.memory_space<vmem>>, %arg8: memref<1x2xf32, #tpu.memory_space<vmem>>, %arg9: memref<1x16xf32, #tpu.memory_space<vmem>>, %arg10: memref<1x16xf32, #tpu.memory_space<vmem>>, %arg11: memref<1x8x8x16xf32, #tpu.memory_space<vmem>>, %arg12: memref<10x10x2xf32, #tpu.memory_space<vmem>>) attributes {dimension_semantics = [#tpu.dimension_semantics<parallel>], iteration_bounds = array<i64: 2>, scalar_prefetch = 0 : i64, scratch_operands = 1 : i64, tpu.core_type = #tpu.core_type<tc>, window_params = [{transform_indices = @transform_0, window_bounds = array<i64: 1, 8, 8, 32>}, {pipeline_mode = #tpu.pipeline_mode<synchronous>, transform_indices = @transform_1, window_bounds = array<i64: 32, 2>}, {pipeline_mode = #tpu.pipeline_mode<synchronous>, transform_indices = @transform_2, window_bounds = array<i64: 18, 2>}, {pipeline_mode = #tpu.pipeline_mode<synchronous>, transform_indices = @transform_3, window_bounds = array<i64: 2, 16>}, {pipeline_mode = #tpu.pipeline_mode<synchronous>, transform_indices = @transform_4, window_bounds = array<i64: 1, 2>}, {pipeline_mode = #tpu.pipeline_mode<synchronous>, transform_indices = @transform_5, window_bounds = array<i64: 1, 2>}, {pipeline_mode = #tpu.pipeline_mode<synchronous>, transform_indices = @transform_6, window_bounds = array<i64: 1, 2>}, {pipeline_mode = #tpu.pipeline_mode<synchronous>, transform_indices = @transform_7, window_bounds = array<i64: 1, 2>}, {pipeline_mode = #tpu.pipeline_mode<synchronous>, transform_indices = @transform_8, window_bounds = array<i64: 1, 16>}, {pipeline_mode = #tpu.pipeline_mode<synchronous>, transform_indices = @transform_9, window_bounds = array<i64: 1, 16>}, {transform_indices = @transform_10, window_bounds = array<i64: 1, 8, 8, 16>}]} {
    %c0 = arith.constant 0 : index
    %c0_0 = arith.constant 0 : index
    %c0_1 = arith.constant 0 : index
    %c0_2 = arith.constant 0 : index
    %0 = vector.load %arg1[%c0, %c0_0, %c0_1, %c0_2] : memref<1x8x8x32xf32, #tpu.memory_space<vmem>>, vector<1x8x8x32xf32>
    %1 = vector.shape_cast %0 : vector<1x8x8x32xf32> to vector<8x8x32xf32>
    %2 = vector.shape_cast %1 : vector<8x8x32xf32> to vector<64x32xf32>
    %c0_3 = arith.constant 0 : index
    %c0_4 = arith.constant 0 : index
    %3 = vector.load %arg2[%c0_3, %c0_4] : memref<32x2xf32, #tpu.memory_space<vmem>>, vector<32x2xf32>
    %cst = arith.constant dense<0.000000e+00> : vector<64x2xf32>
    %4 = tpu.matmul %2, %3, %cst {dimension_numbers = #tpu.dot_dimension_numbers<[1], [0], [0], [1], [0, 0, 1, 1], [], []>} : vector<64x32xf32>, vector<32x2xf32>, vector<64x2xf32> -> vector<64x2xf32>
    %c0_5 = arith.constant 0 : index
    %c0_6 = arith.constant 0 : index
    %5 = vector.load %arg5[%c0_5, %c0_6] : memref<1x2xf32, #tpu.memory_space<vmem>>, vector<1x2xf32>
    %6 = vector.broadcast %5 : vector<1x2xf32> to vector<64x2xf32>
    %7 = arith.mulf %4, %6 : vector<64x2xf32>
    %c0_7 = arith.constant 0 : index
    %c0_8 = arith.constant 0 : index
    %8 = vector.load %arg6[%c0_7, %c0_8] : memref<1x2xf32, #tpu.memory_space<vmem>>, vector<1x2xf32>
    %9 = vector.broadcast %8 : vector<1x2xf32> to vector<64x2xf32>
    %10 = arith.addf %7, %9 : vector<64x2xf32>
    %cst_9 = arith.constant 0.000000e+00 : f32
    %11 = vector.broadcast %cst_9 : f32 to vector<64x2xf32>
    %12 = arith.maximumf %10, %11 : vector<64x2xf32>
    %cst_10 = arith.constant 0.000000e+00 : f32
    %13 = vector.broadcast %cst_10 : f32 to vector<10x10x2xf32>
    %c0_11 = arith.constant 0 : index
    %c0_12 = arith.constant 0 : index
    %c0_13 = arith.constant 0 : index
    %14 = vector.load %arg12[%c0_11, %c0_12, %c0_13] : memref<10x10x2xf32, #tpu.memory_space<vmem>>, vector<10x10x2xf32>
    tpu.vector_store %arg12[%c0_11, %c0_12, %c0_13], %13 {strides = array<i32>} : memref<10x10x2xf32, #tpu.memory_space<vmem>>, vector<10x10x2xf32>,
    %15 = vector.shape_cast %12 : vector<64x2xf32> to vector<8x8x2xf32>
    %c1 = arith.constant 1 : index
    %c1_14 = arith.constant 1 : index
    %c0_15 = arith.constant 0 : index
    %16 = vector.load %arg12[%c1, %c1_14, %c0_15] : memref<10x10x2xf32, #tpu.memory_space<vmem>>, vector<8x8x2xf32>
    tpu.vector_store %arg12[%c1, %c1_14, %c0_15], %15 {strides = array<i32>} : memref<10x10x2xf32, #tpu.memory_space<vmem>>, vector<8x8x2xf32>,
    %cst_16 = arith.constant 0.000000e+00 : f32
    %17 = vector.broadcast %cst_16 : f32 to vector<64x2xf32>
    %c0_17 = arith.constant 0 : index
    %c0_18 = arith.constant 0 : index
    %c0_19 = arith.constant 0 : index
    %18 = vector.load %arg12[%c0_17, %c0_18, %c0_19] : memref<10x10x2xf32, #tpu.memory_space<vmem>>, vector<8x8x2xf32>
    %19 = vector.shape_cast %18 : vector<8x8x2xf32> to vector<64x2xf32>
    %c0_20 = arith.constant 0 : index
    %c0_21 = arith.constant 0 : index
    %20 = vector.load %arg3[%c0_20, %c0_21] : memref<18x2xf32, #tpu.memory_space<vmem>>, vector<2x2xf32>
    %cst_22 = arith.constant dense<0.000000e+00> : vector<64x2xf32>
    %21 = tpu.matmul %19, %20, %cst_22 {dimension_numbers = #tpu.dot_dimension_numbers<[1], [0], [0], [1], [0, 0, 1, 1], [], []>} : vector<64x2xf32>, vector<2x2xf32>, vector<64x2xf32> -> vector<64x2xf32>
    %22 = arith.addf %17, %21 : vector<64x2xf32>
    %c0_23 = arith.constant 0 : index
    %c1_24 = arith.constant 1 : index
    %c0_25 = arith.constant 0 : index
    %23 = vector.load %arg12[%c0_23, %c1_24, %c0_25] : memref<10x10x2xf32, #tpu.memory_space<vmem>>, vector<8x8x2xf32>
    %24 = vector.shape_cast %23 : vector<8x8x2xf32> to vector<64x2xf32>
    %c2 = arith.constant 2 : index
    %c0_26 = arith.constant 0 : index
    %25 = vector.load %arg3[%c2, %c0_26] : memref<18x2xf32, #tpu.memory_space<vmem>>, vector<2x2xf32>
    %cst_27 = arith.constant dense<0.000000e+00> : vector<64x2xf32>
    %26 = tpu.matmul %24, %25, %cst_27 {dimension_numbers = #tpu.dot_dimension_numbers<[1], [0], [0], [1], [0, 0, 1, 1], [], []>} : vector<64x2xf32>, vector<2x2xf32>, vector<64x2xf32> -> vector<64x2xf32>
    %27 = arith.addf %22, %26 : vector<64x2xf32>
    %c0_28 = arith.constant 0 : index
    %c2_29 = arith.constant 2 : index
    %c0_30 = arith.constant 0 : index
    %28 = vector.load %arg12[%c0_28, %c2_29, %c0_30] : memref<10x10x2xf32, #tpu.memory_space<vmem>>, vector<8x8x2xf32>
    %29 = vector.shape_cast %28 : vector<8x8x2xf32> to vector<64x2xf32>
    %c4 = arith.constant 4 : index
    %c0_31 = arith.constant 0 : index
    %30 = vector.load %arg3[%c4, %c0_31] : memref<18x2xf32, #tpu.memory_space<vmem>>, vector<2x2xf32>
    %cst_32 = arith.constant dense<0.000000e+00> : vector<64x2xf32>
    %31 = tpu.matmul %29, %30, %cst_32 {dimension_numbers = #tpu.dot_dimension_numbers<[1], [0], [0], [1], [0, 0, 1, 1], [], []>} : vector<64x2xf32>, vector<2x2xf32>, vector<64x2xf32> -> vector<64x2xf32>
    %32 = arith.addf %27, %31 : vector<64x2xf32>
    %c1_33 = arith.constant 1 : index
    %c0_34 = arith.constant 0 : index
    %c0_35 = arith.constant 0 : index
    %33 = vector.load %arg12[%c1_33, %c0_34, %c0_35] : memref<10x10x2xf32, #tpu.memory_space<vmem>>, vector<8x8x2xf32>
    %34 = vector.shape_cast %33 : vector<8x8x2xf32> to vector<64x2xf32>
    %c6 = arith.constant 6 : index
    %c0_36 = arith.constant 0 : index
    %35 = vector.load %arg3[%c6, %c0_36] : memref<18x2xf32, #tpu.memory_space<vmem>>, vector<2x2xf32>
    %cst_37 = arith.constant dense<0.000000e+00> : vector<64x2xf32>
    %36 = tpu.matmul %34, %35, %cst_37 {dimension_numbers = #tpu.dot_dimension_numbers<[1], [0], [0], [1], [0, 0, 1, 1], [], []>} : vector<64x2xf32>, vector<2x2xf32>, vector<64x2xf32> -> vector<64x2xf32>
    %37 = arith.addf %32, %36 : vector<64x2xf32>
    %c1_38 = arith.constant 1 : index
    %c1_39 = arith.constant 1 : index
    %c0_40 = arith.constant 0 : index
    %38 = vector.load %arg12[%c1_38, %c1_39, %c0_40] : memref<10x10x2xf32, #tpu.memory_space<vmem>>, vector<8x8x2xf32>
    %39 = vector.shape_cast %38 : vector<8x8x2xf32> to vector<64x2xf32>
    %c8 = arith.constant 8 : index
    %c0_41 = arith.constant 0 : index
    %40 = vector.load %arg3[%c8, %c0_41] : memref<18x2xf32, #tpu.memory_space<vmem>>, vector<2x2xf32>
    %cst_42 = arith.constant dense<0.000000e+00> : vector<64x2xf32>
    %41 = tpu.matmul %39, %40, %cst_42 {dimension_numbers = #tpu.dot_dimension_numbers<[1], [0], [0], [1], [0, 0, 1, 1], [], []>} : vector<64x2xf32>, vector<2x2xf32>, vector<64x2xf32> -> vector<64x2xf32>
    %42 = arith.addf %37, %41 : vector<64x2xf32>
    %c1_43 = arith.constant 1 : index
    %c2_44 = arith.constant 2 : index
    %c0_45 = arith.constant 0 : index
    %43 = vector.load %arg12[%c1_43, %c2_44, %c0_45] : memref<10x10x2xf32, #tpu.memory_space<vmem>>, vector<8x8x2xf32>
    %44 = vector.shape_cast %43 : vector<8x8x2xf32> to vector<64x2xf32>
    %c10 = arith.constant 10 : index
    %c0_46 = arith.constant 0 : index
    %45 = vector.load %arg3[%c10, %c0_46] : memref<18x2xf32, #tpu.memory_space<vmem>>, vector<2x2xf32>
    %cst_47 = arith.constant dense<0.000000e+00> : vector<64x2xf32>
    %46 = tpu.matmul %44, %45, %cst_47 {dimension_numbers = #tpu.dot_dimension_numbers<[1], [0], [0], [1], [0, 0, 1, 1], [], []>} : vector<64x2xf32>, vector<2x2xf32>, vector<64x2xf32> -> vector<64x2xf32>
    %47 = arith.addf %42, %46 : vector<64x2xf32>
    %c2_48 = arith.constant 2 : index
    %c0_49 = arith.constant 0 : index
    %c0_50 = arith.constant 0 : index
    %48 = vector.load %arg12[%c2_48, %c0_49, %c0_50] : memref<10x10x2xf32, #tpu.memory_space<vmem>>, vector<8x8x2xf32>
    %49 = vector.shape_cast %48 : vector<8x8x2xf32> to vector<64x2xf32>
    %c12 = arith.constant 12 : index
    %c0_51 = arith.constant 0 : index
    %50 = vector.load %arg3[%c12, %c0_51] : memref<18x2xf32, #tpu.memory_space<vmem>>, vector<2x2xf32>
    %cst_52 = arith.constant dense<0.000000e+00> : vector<64x2xf32>
    %51 = tpu.matmul %49, %50, %cst_52 {dimension_numbers = #tpu.dot_dimension_numbers<[1], [0], [0], [1], [0, 0, 1, 1], [], []>} : vector<64x2xf32>, vector<2x2xf32>, vector<64x2xf32> -> vector<64x2xf32>
    %52 = arith.addf %47, %51 : vector<64x2xf32>
    %c2_53 = arith.constant 2 : index
    %c1_54 = arith.constant 1 : index
    %c0_55 = arith.constant 0 : index
    %53 = vector.load %arg12[%c2_53, %c1_54, %c0_55] : memref<10x10x2xf32, #tpu.memory_space<vmem>>, vector<8x8x2xf32>
    %54 = vector.shape_cast %53 : vector<8x8x2xf32> to vector<64x2xf32>
    %c14 = arith.constant 14 : index
    %c0_56 = arith.constant 0 : index
    %55 = vector.load %arg3[%c14, %c0_56] : memref<18x2xf32, #tpu.memory_space<vmem>>, vector<2x2xf32>
    %cst_57 = arith.constant dense<0.000000e+00> : vector<64x2xf32>
    %56 = tpu.matmul %54, %55, %cst_57 {dimension_numbers = #tpu.dot_dimension_numbers<[1], [0], [0], [1], [0, 0, 1, 1], [], []>} : vector<64x2xf32>, vector<2x2xf32>, vector<64x2xf32> -> vector<64x2xf32>
    %57 = arith.addf %52, %56 : vector<64x2xf32>
    %c2_58 = arith.constant 2 : index
    %c2_59 = arith.constant 2 : index
    %c0_60 = arith.constant 0 : index
    %58 = vector.load %arg12[%c2_58, %c2_59, %c0_60] : memref<10x10x2xf32, #tpu.memory_space<vmem>>, vector<8x8x2xf32>
    %59 = vector.shape_cast %58 : vector<8x8x2xf32> to vector<64x2xf32>
    %c16 = arith.constant 16 : index
    %c0_61 = arith.constant 0 : index
    %60 = vector.load %arg3[%c16, %c0_61] : memref<18x2xf32, #tpu.memory_space<vmem>>, vector<2x2xf32>
    %cst_62 = arith.constant dense<0.000000e+00> : vector<64x2xf32>
    %61 = tpu.matmul %59, %60, %cst_62 {dimension_numbers = #tpu.dot_dimension_numbers<[1], [0], [0], [1], [0, 0, 1, 1], [], []>} : vector<64x2xf32>, vector<2x2xf32>, vector<64x2xf32> -> vector<64x2xf32>
    %62 = arith.addf %57, %61 : vector<64x2xf32>
    %c0_63 = arith.constant 0 : index
    %c0_64 = arith.constant 0 : index
    %63 = vector.load %arg7[%c0_63, %c0_64] : memref<1x2xf32, #tpu.memory_space<vmem>>, vector<1x2xf32>
    %64 = vector.broadcast %63 : vector<1x2xf32> to vector<64x2xf32>
    %65 = arith.mulf %62, %64 : vector<64x2xf32>
    %c0_65 = arith.constant 0 : index
    %c0_66 = arith.constant 0 : index
    %66 = vector.load %arg8[%c0_65, %c0_66] : memref<1x2xf32, #tpu.memory_space<vmem>>, vector<1x2xf32>
    %67 = vector.broadcast %66 : vector<1x2xf32> to vector<64x2xf32>
    %68 = arith.addf %65, %67 : vector<64x2xf32>
    %cst_67 = arith.constant 0.000000e+00 : f32
    %69 = vector.broadcast %cst_67 : f32 to vector<64x2xf32>
    %70 = arith.maximumf %68, %69 : vector<64x2xf32>
    %c0_68 = arith.constant 0 : index
    %c0_69 = arith.constant 0 : index
    %71 = vector.load %arg4[%c0_68, %c0_69] : memref<2x16xf32, #tpu.memory_space<vmem>>, vector<2x16xf32>
    %cst_70 = arith.constant dense<0.000000e+00> : vector<64x16xf32>
    %72 = tpu.matmul %70, %71, %cst_70 {dimension_numbers = #tpu.dot_dimension_numbers<[1], [0], [0], [1], [0, 0, 1, 1], [], []>} : vector<64x2xf32>, vector<2x16xf32>, vector<64x16xf32> -> vector<64x16xf32>
    %c0_71 = arith.constant 0 : index
    %c0_72 = arith.constant 0 : index
    %73 = vector.load %arg9[%c0_71, %c0_72] : memref<1x16xf32, #tpu.memory_space<vmem>>, vector<1x16xf32>
    %74 = vector.broadcast %73 : vector<1x16xf32> to vector<64x16xf32>
    %75 = arith.mulf %72, %74 : vector<64x16xf32>
    %c0_73 = arith.constant 0 : index
    %c0_74 = arith.constant 0 : index
    %76 = vector.load %arg10[%c0_73, %c0_74] : memref<1x16xf32, #tpu.memory_space<vmem>>, vector<1x16xf32>
    %77 = vector.broadcast %76 : vector<1x16xf32> to vector<64x16xf32>
    %78 = arith.addf %75, %77 : vector<64x16xf32>
    %cst_75 = arith.constant 0.000000e+00 : f32
    %79 = vector.broadcast %cst_75 : f32 to vector<64x16xf32>
    %80 = arith.maximumf %78, %79 : vector<64x16xf32>
    %81 = vector.extract_strided_slice %2 {offsets = [0, 0], sizes = [64, 8], strides = [1, 1]} : vector<64x32xf32> to vector<64x8xf32>
    %82 = vector.extract_strided_slice %2 {offsets = [0, 8], sizes = [64, 8], strides = [1, 1]} : vector<64x32xf32> to vector<64x8xf32>
    %83 = arith.maximumf %81, %82 : vector<64x8xf32>
    %84 = vector.extract_strided_slice %2 {offsets = [0, 16], sizes = [64, 8], strides = [1, 1]} : vector<64x32xf32> to vector<64x8xf32>
    %85 = vector.extract_strided_slice %2 {offsets = [0, 24], sizes = [64, 8], strides = [1, 1]} : vector<64x32xf32> to vector<64x8xf32>
    %86 = arith.maximumf %84, %85 : vector<64x8xf32>
    %87 = arith.maximumf %83, %86 : vector<64x8xf32>
    %cst_76 = arith.constant 0.000000e+00 : f32
    %88 = vector.broadcast %cst_76 : f32 to vector<64x8xf32>
    %89 = tpu.concatenate %87, %88 in 1 : vector<64x8xf32>, vector<64x8xf32> -> vector<64x16xf32>
    %90 = arith.addf %80, %89 : vector<64x16xf32>
    %cst_77 = arith.constant 0.000000e+00 : f32
    %91 = vector.broadcast %cst_77 : f32 to vector<64x16xf32>
    %92 = arith.maximumf %90, %91 : vector<64x16xf32>
    %93 = vector.shape_cast %92 : vector<64x16xf32> to vector<8x8x16xf32>
    %c0_78 = arith.constant 0 : index
    %c0_79 = arith.constant 0 : index
    %c0_80 = arith.constant 0 : index
    %c0_81 = arith.constant 0 : index
    %94 = vector.load %arg11[%c0_78, %c0_79, %c0_80, %c0_81] : memref<1x8x8x16xf32, #tpu.memory_space<vmem>>, vector<1x8x8x16xf32>
    %95 = vector.shape_cast %94 : vector<1x8x8x16xf32> to vector<8x8x16xf32>
    %96 = vector.shape_cast %93 : vector<8x8x16xf32> to vector<1x8x8x16xf32>
    tpu.vector_store %arg11[%c0_78, %c0_79, %c0_80, %c0_81], %96 {strides = array<i32>} : memref<1x8x8x16xf32, #tpu.memory_space<vmem>>, vector<1x8x8x16xf32>,
    return
  }
  func.func @transform_0(%arg0: i32) -> (i32, i32, i32, i32) {
    %c0_i32 = arith.constant 0 : i32
    %c0_i32_0 = arith.constant 0 : i32
    %c0_i32_1 = arith.constant 0 : i32
    %c0_i32_2 = arith.constant 0 : i32
    return %arg0, %c0_i32, %c0_i32_0, %c0_i32_1 : i32, i32, i32, i32
  }
  func.func @transform_1(%arg0: i32) -> (i32, i32) {
    %c0_i32 = arith.constant 0 : i32
    %c0_i32_0 = arith.constant 0 : i32
    %c0_i32_1 = arith.constant 0 : i32
    return %c0_i32, %c0_i32_0 : i32, i32
  }
  func.func @transform_2(%arg0: i32) -> (i32, i32) {
    %c0_i32 = arith.constant 0 : i32
    %c0_i32_0 = arith.constant 0 : i32
    %c0_i32_1 = arith.constant 0 : i32
    return %c0_i32, %c0_i32_0 : i32, i32
  }
  func.func @transform_3(%arg0: i32) -> (i32, i32) {
    %c0_i32 = arith.constant 0 : i32
    %c0_i32_0 = arith.constant 0 : i32
    %c0_i32_1 = arith.constant 0 : i32
    return %c0_i32, %c0_i32_0 : i32, i32
  }
  func.func @transform_4(%arg0: i32) -> (i32, i32) {
    %c0_i32 = arith.constant 0 : i32
    %c0_i32_0 = arith.constant 0 : i32
    %c0_i32_1 = arith.constant 0 : i32
    return %c0_i32, %c0_i32_0 : i32, i32
  }
  func.func @transform_5(%arg0: i32) -> (i32, i32) {
    %c0_i32 = arith.constant 0 : i32
    %c0_i32_0 = arith.constant 0 : i32
    %c0_i32_1 = arith.constant 0 : i32
    return %c0_i32, %c0_i32_0 : i32, i32
  }
  func.func @transform_6(%arg0: i32) -> (i32, i32) {
    %c0_i32 = arith.constant 0 : i32
    %c0_i32_0 = arith.constant 0 : i32
    %c0_i32_1 = arith.constant 0 : i32
    return %c0_i32, %c0_i32_0 : i32, i32
  }
  func.func @transform_7(%arg0: i32) -> (i32, i32) {
    %c0_i32 = arith.constant 0 : i32
    %c0_i32_0 = arith.constant 0 : i32
    %c0_i32_1 = arith.constant 0 : i32
    return %c0_i32, %c0_i32_0 : i32, i32
  }
  func.func @transform_8(%arg0: i32) -> (i32, i32) {
    %c0_i32 = arith.constant 0 : i32
    %c0_i32_0 = arith.constant 0 : i32
    %c0_i32_1 = arith.constant 0 : i32
    return %c0_i32, %c0_i32_0 : i32, i32
  }
  func.func @transform_9(%arg0: i32) -> (i32, i32) {
    %c0_i32 = arith.constant 0 : i32
    %c0_i32_0 = arith.constant 0 : i32
    %c0_i32_1 = arith.constant 0 : i32
    return %c0_i32, %c0_i32_0 : i32, i32
  }
  func.func @transform_10(%arg0: i32) -> (i32, i32, i32, i32) {
    %c0_i32 = arith.constant 0 : i32
    %c0_i32_0 = arith.constant 0 : i32
    %c0_i32_1 = arith.constant 0 : i32
    %c0_i32_2 = arith.constant 0 : i32
    return %arg0, %c0_i32, %c0_i32_0, %c0_i32_1 : i32, i32, i32, i32
  }
}

</mosaic_0001>

<bundles_post_ra>
// kernel: downsample_bottleneck.1
= control target key start
LH: loop header
LB: loop body
LE: loop exit
PB: predicated region body
PF: predicated region fallthrough
CT: control target
= control target key end

     0   :  { %15 = vsyncpa [#allocation4], 0  ;;  %s3393_s0 = inlined_call_operand.vmem [shape: f32[2,8,8,32], index: 0, kind: input, shape index: {}]   ;;  %s3394_s1 = inlined_call_operand.vmem [shape: f32[32,2], index: 1, kind: input, shape index: {}]   ;;  %s3395_s2 = inlined_call_operand.vmem [shape: f32[18,2], index: 2, kind: input, shape index: {}]   ;;  %s3396_s3 = inlined_call_operand.vmem [shape: f32[2,16], index: 3, kind: input, shape index: {}]   ;;  %s3397_s4 = inlined_call_operand.vmem [shape: f32[1,2], index: 4, kind: input, shape index: {}]   ;;  %s3398_s5 = inlined_call_operand.vmem [shape: f32[1,2], index: 5, kind: input, shape index: {}]   ;;  %s3399_s6 = inlined_call_operand.vmem [shape: f32[1,2], index: 6, kind: input, shape index: {}]   ;;  %s3400_s7 = inlined_call_operand.vmem [shape: f32[1,2], index: 7, kind: input, shape index: {}]   ;;  %s3401_s8 = inlined_call_operand.vmem [shape: f32[1,16], index: 8, kind: input, shape index: {}]   ;;  %s3402_s9 = inlined_call_operand.vmem [shape: f32[1,16], index: 9, kind: input, shape index: {}]   ;;  %s3403_s10 = inlined_call_operand.hbm [shape: f32[2,8,8,16], index: 10, kind: output, shape index: {}]  }
   0x1   :  { %17 = vsyncpa [#allocation4 + $0x1], 0  ;;  %s2910_s13 = smov 0   ;;  %s2912_s14 = smov 0  }
   0x2   :  { %s2914_s15 = smov 0   ;;  %s2916_s16 = smov 0  }
   0x3 LB: > { %s2931_s17 = sadd.s32 4294967295, %s2847_s16   ;;  %s2287_s18 = sadd.s32 4294967294, %s2847_s16   ;;  %s2847_s16 = sphi %s2916_s16, %s3409_s16   ;;  %s2843_s15 = sphi %s2914_s15, %s3408_s15   ;;  %s2839_s14 = sphi %s2912_s14, %s3407_s14   ;;  %s2835_s13 = sphi %s2910_s13, %s3406_s13  }
   0x4   : > { %s2935_s19 = sadd.s32 1, %s2847_s16   ;;  %s245_s20 = sadd.s32 1, %s2843_s15 }
   0x5   : > { %s242_s21 = ssub.s32 %s2847_s16, %s2935_s19  ;;  %p255_p0 = scmp.ne.s32.totalorder %s2843_s15, %s2839_s14 }
   0x6   : > { %p243_p1 = scmp.eq.s32.totalorder %s242_s21, 0  ;;  %p256_p2 = scmp.eq.s32.totalorder %s2931_s17, 1 }
   0x7   : > { %p261_p3 = scmp.ne.s32.totalorder %s2839_s14, %s2835_s13  ;;  %p262_p4 = scmp.eq.s32.totalorder %s2287_s18, 1 }
   0x8   : > { %s2946_s22 = scalar_select %p243_p1, %s2843_s15, %s245_s20  }
   0x9   : > { %p2948_p5 = por %p256_p2, %p255_p0  ;;  %p2952_p6 = por %p262_p4, %p261_p3 }
   0xa   : > { %p2290_p7 = scmp.ge.s32.totalorder %s2847_s16, 1  ;;  %p315_p8 = scmp.lt.s32.totalorder %s2847_s16, 3 }
   0xc   : > { %p316_p9 = pnand %p2290_p7, %p315_p8 }
   0xd   : > { %v366_v0 = vld [vmem:[%s3394_s1] sm:$0xff] (!%p316_p9)  ;;  %v367_v1 = vld [vmem:[%s3394_s1 + $0x8] sm:$0xff] (!%p316_p9)  ;;  %v368_v2 = vld [vmem:[%s3394_s1 + $0x10] sm:$0xff] (!%p316_p9)  ;;  %p353_p10 = scmp.lt.s32.totalorder (!%p316_p9), %s2931_s17, 1  ;;  %vm370_vm0 = vcmask (!%p316_p9), 261120   ;;  %vm538_vm1 = vcmask (!%p316_p9), 15360  }
   0xe   : > { %319 = sbr.rel (%p316_p9) target bundleno = 808 (0x328), region = 60  ;;  %v2667_v3 = vpack.c.bf16 (!%p316_p9), %v367_v1, %v366_v0  ;;  %v369_v4 = vld [vmem:[%s3394_s1 + $0x18] sm:$0xff] (!%p316_p9)  ;;  %vm540_vm2 = vcmask (!%p316_p9), 9216   ;;  %v2849_v14 = vmov (!%p316_p9), 0.0   ;;  %v586_v15 = vld [vmem:[%s3395_s2 + $0x2] sm:$0x3] (!%p316_p9) }
   0xf   : > { %v2671_v5 = vpack.c.bf16 (!%p316_p9), %v369_v4, %v368_v2  ;;  %544 = vst.msk [vmem:[#allocation2 + $0x20] sm:$0xff] (!%p316_p9), %vm538_vm1, %v2849_v14  ;;  %539 = vst.msk [vmem:[#allocation2] sm:$0xff] (!%p316_p9), %vm538_vm1, %v2849_v14  ;;  %vm611_vm3 = vcmask (!%p316_p9), 1041408   ;;  %v3036_v17 = vld [vmem:[%s3395_s2 + $0x6] sm:$0x3] (!%p316_p9)  ;;  %s2850_s21 = smov (!%p316_p9), 120  }
  0x10   : > { %2668 = vmatprep.subr.bf16.mxu0 (!%p316_p9), %v2667_v3  ;;  %545 = vst.msk [vmem:[#allocation2 + $0x28] sm:$0x3] (!%p316_p9), %vm540_vm2, %v2849_v14  ;;  %541 = vst.msk [vmem:[#allocation2 + $0x8] sm:$0x3] (!%p316_p9), %vm540_vm2, %v2849_v14  ;;  %2675 = vmatprep.subr.msk.mxu1 (!%p316_p9), %vm611_vm3, %v3036_v17  ;;  %v3045_v18 = vld [vmem:[%s3395_s2 + $0x8] sm:$0x3] (!%p316_p9) }
  0x11   : > { %2670 = vmatpush3.bf16.msra.mxu0 (!%p316_p9), %v2667_v3  ;;  %542 = vst.msk [vmem:[#allocation2 + $0x10] sm:$0xff] (!%p316_p9), %vm538_vm1, %v2849_v14  ;;  %546 = vst.msk [vmem:[#allocation2 + $0x30] sm:$0xff] (!%p316_p9), %vm538_vm1, %v2849_v14  ;;  %2676 = vmatpush3.msk.msra.mxu1 (!%p316_p9), %vm611_vm3, %v3036_v17  ;;  %v577_v19 = vld [vmem:[%s3395_s2] sm:$0x3] (!%p316_p9)  ;;  %v860_v52 = vld [vmem:[%s3395_s2 + $0x4] sm:$0x3] (!%p316_p9) }
  0x12   : > { %2672 = vmatprep.subr.bf16.mxu0 (!%p316_p9), %v2671_v5  ;;  %543 = vst.msk [vmem:[#allocation2 + $0x18] sm:$0x3] (!%p316_p9), %vm540_vm2, %v2849_v14  ;;  %547 = vst.msk [vmem:[#allocation2 + $0x38] sm:$0x3] (!%p316_p9), %vm540_vm2, %v2849_v14  ;;  %2583 = vmatprep.subr.msk.mxu1 (!%p316_p9), %vm611_vm3, %v3045_v18  ;;  %v2302_v20 = vld [vmem:[%s3397_s4] ss:$0 sm:$0xff] (!%p316_p9) }
  0x13   : > { %548 = vst.msk [vmem:[#allocation2 + $0x40] sm:$0xff] (!%p316_p9), %vm538_vm1, %v2849_v14  ;;  %550 = vst.msk [vmem:[#allocation2 + $0x50] sm:$0xff] (!%p316_p9), %vm538_vm1, %v2849_v14  ;;  %v2303_v22 = vld [vmem:[%s3398_s5] ss:$0 sm:$0xff] (!%p316_p9)  ;;  %v1307_v61 = vld [vmem:[%s3395_s2 + $0xa] sm:$0x3] (!%p316_p9) }
  0x14   : > { %549 = vst.msk [vmem:[#allocation2 + $0x48] sm:$0x3] (!%p316_p9), %vm540_vm2, %v2849_v14  ;;  %551 = vst.msk [vmem:[#allocation2 + $0x58] sm:$0x3] (!%p316_p9), %vm540_vm2, %v2849_v14  ;;  %s2851_s28 = smov (!%p316_p9), 112   ;;  %vm2177_vm4 = vcmask (!%p316_p9), 64512  }
  0x15   : > { %s354_s18 = scalar_select %p353_p10, %s2931_s17, 1  ;;  %2674 = vmatpush3.bf16.msra.mxu0 %v2671_v5  ;;  %552 = vst.msk [vmem:[#allocation2 + $0x60] sm:$0xff] %vm538_vm1, %v2849_v14  ;;  %554 = vst.msk [vmem:[#allocation2 + $0x70] sm:$0xff] %vm538_vm1, %v2849_v14  ;;  %vm2202_vm5 = vcmask 130048  }
  0x16   : > { %553 = vst.msk [vmem:[#allocation2 + $0x68] sm:$0x3] %vm540_vm2, %v2849_v14  ;;  %555 = vst.msk [vmem:[#allocation2 + $0x78] sm:$0x3] %vm540_vm2, %v2849_v14  ;;  %2527 = vmatprep.subr.msk.mxu0 %vm611_vm3, %v586_v15  ;;  %v569_v2 = vld [vmem:[#allocation2] sm:$0xff]  ;;  %s2404_s11 = sshll.u32 %s2931_s17, 10 }
  0x17   : > { %s2403_s20 = sshll.u32 %s354_s18, 6  ;;  %556 = vst.msk [vmem:[#allocation2 + $0x80] sm:$0xff] %vm538_vm1, %v2849_v14  ;;  %558 = vst.msk [vmem:[#allocation2 + $0x90] sm:$0xff] %vm538_vm1, %v2849_v14  ;;  %v578_v16 = vld [vmem:[#allocation2 + $0x1] sm:$0xff] }
  0x18   : > { %s357_s26 = scalar_lea.vmem %s3393_s0, %s2403_s20  ;;  %557 = vst.msk [vmem:[#allocation2 + $0x88] sm:$0x3] %vm540_vm2, %v2849_v14  ;;  %559 = vst.msk [vmem:[#allocation2 + $0x98] sm:$0x3] %vm540_vm2, %v2849_v14 }
  0x19   : > { %v2975_v6 = vld [vmem:[%s357_s26] sm:$0xff]  ;;  %v2979_v7 = vld [vmem:[%s357_s26 + $0x8] sm:$0xff]  ;;  %v2981_v8 = vld [vmem:[%s357_s26 + $0x10] sm:$0xff] }
  0x1a   : > { %2515 = vmatprep.mubr.msk.f32.mxu0 %vm370_vm0, %v2975_v6  ;;  %v2987_v9 = vld [vmem:[%s357_s26 + $0x18] sm:$0xff]  ;;  %v2989_v10 = vld [vmem:[%s357_s26 + $0x20] sm:$0xff]  ;;  %v2995_v11 = vld [vmem:[%s357_s26 + $0x28] sm:$0xff]  ;;  %2105 = vrot.lane.b32.xlu0 %v2975_v6, %s2850_s21 }
  0x1b   : > { %2516 = vmatmul.mubr.msk.f32.vlgmr.msra.gmra.mrb[0].mxu0 %vm370_vm0, %v2979_v7  ;;  %v2997_v12 = vld [vmem:[%s357_s26 + $0x30] sm:$0xff]  ;;  %v3003_v13 = vld [vmem:[%s357_s26 + $0x38] sm:$0xff]  ;;  %2109 = vrot.lane.b32.xlu1 %v2981_v8, %s2850_s21  ;;  %s2852_s26 = smov [#allocation3]  }
  0x1c   : > { %2518 = vmatprep.mubr.msk.f32.mxu0 %vm370_vm0, %v2981_v8  ;;  %2528 = vmatpush3.msk.msra.mxu0 %vm611_vm3, %v586_v15  ;;  %s2789_s27 = sshll.u32 %s2852_s26, 4  ;;  %s2790_s27 = int_to_ptr.vmem [resolvable:$false] %s2789_s27 }
  0x1d   : > { %2541 = vmatprep.subr.msk.mxu0 %vm611_vm3, %v577_v19 }
  0x1e   : > { %2107 = vrot.lane.b32.xlu0 %v2979_v7, %s2850_s21 }
  0x1f   : > { %2519 = vmatmul.mubr.msk.f32.gmra.mrb[2].mxu0 %vm370_vm0, %v2987_v9  ;;  %2111 = vrot.lane.b32.xlu1 %v2987_v9, %s2850_s21 }
  0x20   : > { %2521 = vmatprep.mubr.msk.f32.mxu0 %vm370_vm0, %v2989_v10 }
  0x22   : > { %2113 = vrot.lane.b32.xlu0 %v2989_v10, %s2850_s21 }
  0x23   : > { %2522 = vmatmul.mubr.msk.f32.gmra.mrb[4].mxu0 %vm370_vm0, %v2995_v11  ;;  %2115 = vrot.lane.b32.xlu1 %v2995_v11, %s2850_s21 }
  0x24   : > { %2524 = vmatprep.mubr.msk.f32.mxu0 %vm370_vm0, %v2997_v12 }
  0x26   : > { %2117 = vrot.lane.b32.xlu0 %v2997_v12, %s2850_s21 }
  0x27   : > { %2525 = vmatmul.mubr.msk.f32.gmra.mrb[6].mxu0 %vm370_vm0, %v3003_v13  ;;  %2119 = vrot.lane.b32.xlu1 %v3003_v13, %s2850_s21  ;;  %s3342_s21 = scalar_lea.hbm %s3403_s10, %s2404_s11 }
  0x28   : > { %2529 = vmatprep.mubr.msk.f32.mxu0 %vm538_vm1, %v578_v16  ;;  %v1457_v16 = vld [vmem:[%s3395_s2 + $0xc] sm:$0x3] }
  0xee   : > { %v2517_v21 = vpop.f32.mrb[0].mxu0 }
  0xef   : > { %v508_v23 = vmul.f32 %v2517_v21, %v2302_v20  ;;  %v461_v24 = vpop.f32.mrb[1].mxu0 }
  0xf0   : > { %v507_v25 = vmul.f32 %v2302_v20, %v461_v24 }
  0xf1   : > { %v523_v26 = vadd.f32 %v2303_v22, %v508_v23 }
  0xf2   : > { %v522_v27 = vadd.f32 %v2303_v22, %v507_v25  ;;  %v2520_v28 = vpop.f32.mrb[2].mxu0 }
  0xf3   : > { %v531_v29 = vmax.f32 %v523_v26, 0.0  ;;  %v510_v30 = vmul.f32 %v2520_v28, %v2302_v20  ;;  %v471_v31 = vpop.f32.mrb[3].mxu0  ;;  %v1755_v28 = vld [vmem:[%s3395_s2 + $0x10] sm:$0x3] }
  0xf4   : > { %v530_v32 = vmax.f32 %v522_v27, 0.0  ;;  %v509_v33 = vmul.f32 %v2302_v20, %v471_v31  ;;  %v1754_v31 = vld [vmem:[#allocation2 + $0x92] sm:$0xff] }
  0xf5   : > { %562 = vst.msk [vmem:[#allocation2 + $0x21] sm:$0xff] %vm538_vm1, %v531_v29  ;;  %v525_v34 = vadd.f32 %v2303_v22, %v510_v30  ;;  %v1456_v29 = vld [vmem:[#allocation2 + $0x90] sm:$0xff] }
  0xf6   : > { %561 = vst.msk [vmem:[#allocation2 + $0x11] sm:$0xff] %vm538_vm1, %v530_v32  ;;  %v524_v35 = vadd.f32 %v2303_v22, %v509_v33  ;;  %v2523_v36 = vpop.f32.mrb[4].mxu0  ;;  %v1605_v30 = vld [vmem:[#allocation2 + $0x91] sm:$0xff]  ;;  %v2106_v32 = vpop.permute.xlu0 %2105 }
  0xf7   : > { %v533_v37 = vmax.f32 %v525_v34, 0.0  ;;  %v512_v38 = vmul.f32 %v2523_v36, %v2302_v20  ;;  %v481_v39 = vpop.f32.mrb[5].mxu0  ;;  %v2110_v33 = vpop.permute.xlu1 %2109  ;;  %v3238_v34 = vmax.f32 %v2975_v6, %v2106_v32 }
  0xf8   : > { %v532_v40 = vmax.f32 %v524_v35, 0.0  ;;  %v511_v41 = vmul.f32 %v2302_v20, %v481_v39  ;;  %v3242_v35 = vmax.f32 %v2981_v8, %v2110_v33 }
  0xf9   : > { %564 = vst.msk [vmem:[#allocation2 + $0x41] sm:$0xff] %vm538_vm1, %v533_v37  ;;  %v527_v42 = vadd.f32 %v2303_v22, %v512_v38  ;;  %2145 = vrot.lane.b32.xlu0 %v3238_v34, %s2851_s28 }
  0xfa   : > { %563 = vst.msk [vmem:[#allocation2 + $0x31] sm:$0xff] %vm538_vm1, %v532_v40  ;;  %v526_v43 = vadd.f32 %v2303_v22, %v511_v41  ;;  %v2526_v44 = vpop.f32.mrb[6].mxu0  ;;  %v2108_v36 = vpop.permute.xlu0 %2107 }
  0xfb   : > { %v535_v45 = vmax.f32 %v527_v42, 0.0  ;;  %v514_v46 = vmul.f32 %v2526_v44, %v2302_v20  ;;  %v491_v47 = vpop.f32.mrb[7].mxu0  ;;  %v2112_v37 = vpop.permute.xlu1 %2111  ;;  %v3245_v38 = vmax.f32 %v2979_v7, %v2108_v36 }
  0xfc   : > { %v534_v48 = vmax.f32 %v526_v43, 0.0  ;;  %v513_v49 = vmul.f32 %v2302_v20, %v491_v47  ;;  %v3077_v54 = vld [vmem:[#allocation2 + $0x21] sm:$0xff]  ;;  %v3250_v39 = vmax.f32 %v2987_v9, %v2112_v37 }
  0xfd   : > { %566 = vst.msk [vmem:[#allocation2 + $0x61] sm:$0xff] %vm538_vm1, %v535_v45  ;;  %v529_v50 = vadd.f32 %v2303_v22, %v514_v46  ;;  %v579_v51 = vld [vmem:[#allocation2 + $0x11] sm:$0xff]  ;;  %v571_v15 = vld [vmem:[#allocation2 + $0x20] sm:$0xff]  ;;  %2149 = vrot.lane.b32.xlu0 %v3242_v35, %s2851_s28  ;;  %2147 = vrot.lane.b32.xlu1 %v3245_v38, %s2851_s28 }
  0xfe   : > { %565 = vst.msk [vmem:[#allocation2 + $0x51] sm:$0xff] %vm538_vm1, %v534_v48  ;;  %v528_v53 = vadd.f32 %v2303_v22, %v513_v49  ;;  %2530 = vmatmul.mubr.msk.f32.vlgmr.msra.gmra.mrb[8].mxu0 %vm538_vm1, %v579_v51  ;;  %v570_v14 = vld [vmem:[#allocation2 + $0x10] sm:$0xff]  ;;  %v854_v21 = vld [vmem:[#allocation2 + $0x22] sm:$0xff]  ;;  %v1606_v22 = vld [vmem:[%s3395_s2 + $0xe] sm:$0x3]  ;;  %v2114_v40 = vpop.permute.xlu0 %2113 }
  0xff   : > { %v537_v55 = vmax.f32 %v529_v50, 0.0  ;;  %2532 = vmatprep.mubr.msk.f32.mxu0 %vm538_vm1, %v3077_v54  ;;  %2542 = vmatpush3.msk.msra.mxu0 %vm611_vm3, %v577_v19  ;;  %v1299_v20 = vld [vmem:[#allocation2 + $0x12] sm:$0xff]  ;;  %v2116_v6 = vpop.permute.xlu1 %2115  ;;  %v3257_v8 = vmax.f32 %v2989_v10, %v2114_v40  ;;  %v2385_v50 = vld [vmem:[%s3399_s6] ss:$0 sm:$0xff] }
 0x100   : > { %v536_v56 = vmax.f32 %v528_v53, 0.0  ;;  %2555 = vmatprep.subr.msk.mxu0 %vm611_vm3, %v860_v52  ;;  %v3093_v59 = vld [vmem:[#allocation2 + $0x41] sm:$0xff]  ;;  %v3254_v41 = vmax.f32 %v2995_v11, %v2116_v6  ;;  %v2386_v53 = vld [vmem:[%s3400_s7] ss:$0 sm:$0xff] }
 0x101   : > { %568 = vst.msk [vmem:[#allocation2 + $0x81] sm:$0xff] %vm538_vm1, %v537_v55  ;;  %v3084_v57 = vld [vmem:[#allocation2 + $0x31] sm:$0xff]  ;;  %v3095_v60 = vld [vmem:[#allocation2 + $0x40] sm:$0xff]  ;;  %2151 = vrot.lane.b32.xlu1 %v3250_v39, %s2851_s28  ;;  %2153 = vrot.lane.b32.xlu0 %v3257_v8, %s2851_s28 }
 0x102   : > { %v3086_v58 = vld [vmem:[#allocation2 + $0x30] sm:$0xff]  ;;  %567 = vst.msk [vmem:[#allocation2 + $0x71] sm:$0xff] %vm538_vm1, %v536_v56  ;;  %2533 = vmatmul.mubr.msk.f32.gmra.mrb[10].mxu0 %vm538_vm1, %v3084_v57  ;;  %v856_v24 = vld [vmem:[#allocation2 + $0x42] sm:$0xff]  ;;  %v2118_v42 = vpop.permute.xlu0 %2117  ;;  %v1934_v11 = vld [vmem:[%s3396_s3] sm:$0x3] }
 0x103   : > { %2574 = vmatprep.mubr.msk.f32.mxu1 %vm538_vm1, %v3086_v58  ;;  %2535 = vmatprep.mubr.msk.f32.mxu0 %vm538_vm1, %v3093_v59  ;;  %v1301_v23 = vld [vmem:[#allocation2 + $0x32] sm:$0xff]  ;;  %v2120_v7 = vpop.permute.xlu1 %2119  ;;  %v3265_v9 = vmax.f32 %v2997_v12, %v2118_v42  ;;  %v2396_v40 = vld [vmem:[%s3401_s8] ss:$0 sm:$0xff] }
 0x104   : > { %2575 = vmatmul.mubr.msk.f32.vlgmr.msra.gmra.mrb[0].mxu1 %vm538_vm1, %v3095_v60  ;;  %v3115_v0 = vld [vmem:[#allocation2 + $0x61] sm:$0xff]  ;;  %v3262_v43 = vmax.f32 %v3003_v13, %v2120_v7 }
 0x105   : > { %2584 = vmatpush3.msk.msra.mxu1 %vm611_vm3, %v3045_v18  ;;  %v3106_v62 = vld [vmem:[#allocation2 + $0x51] sm:$0xff]  ;;  %v3117_v1 = vld [vmem:[#allocation2 + $0x60] sm:$0xff]  ;;  %2155 = vrot.lane.b32.xlu1 %v3254_v41, %s2851_s28 }
 0x106   : > { %v3108_v63 = vld [vmem:[#allocation2 + $0x50] sm:$0xff]  ;;  %2597 = vmatprep.subr.msk.mxu1 %vm611_vm3, %v1307_v61  ;;  %2536 = vmatmul.mubr.msk.f32.gmra.mrb[12].mxu0 %vm538_vm1, %v3106_v62  ;;  %v852_v18 = vld [vmem:[#allocation2 + $0x2] sm:$0xff] }
 0x107   : > { %2577 = vmatprep.mubr.msk.f32.mxu1 %vm538_vm1, %v3108_v63  ;;  %2538 = vmatprep.mubr.msk.f32.mxu0 %vm538_vm1, %v3115_v0  ;;  %v1303_v25 = vld [vmem:[#allocation2 + $0x52] sm:$0xff]  ;;  %v858_v26 = vld [vmem:[#allocation2 + $0x62] sm:$0xff] }
 0x108   : > { %2578 = vmatmul.mubr.msk.f32.gmra.mrb[2].mxu1 %vm538_vm1, %v3117_v1  ;;  %v3131_v5 = vld [vmem:[#allocation2 + $0x80] sm:$0xff]  ;;  %2157 = vrot.lane.b32.xlu0 %v3265_v9, %s2851_s28 }
 0x109   : > { %v3123_v3 = vld [vmem:[#allocation2 + $0x71] sm:$0xff]  ;;  %v1157_v19 = vld [vmem:[#allocation2 + $0x81] sm:$0xff]  ;;  %2159 = vrot.lane.b32.xlu1 %v3262_v43, %s2851_s28  ;;  %s350_s28 = sand.u32 1, %s2839_s14  }
 0x10a   : > { %v3125_v4 = vld [vmem:[#allocation2 + $0x70] sm:$0xff]  ;;  %2539 = vmatmul.mubr.msk.f32.gmra.mrb[14].mxu0 %vm538_vm1, %v3123_v3  ;;  %v1306_v27 = vld [vmem:[#allocation2 + $0x82] sm:$0xff]  ;;  %s2291_s29 = sshll.u32 %s350_s28, 6  ;;  %s3352_s17 = scalar_lea.sflag [#allocation4], %s350_s28 }
 0x10b   : > { %2580 = vmatprep.mubr.msk.f32.mxu1 %vm538_vm1, %v3125_v4  ;;  %2543 = vmatprep.mubr.msk.f32.mxu0 %vm538_vm1, %v569_v2  ;;  %s3313_s30 = scalar_lea.vmem [#allocation3], %s2291_s29  ;;  %s2791_s29 = scalar_lea.vmem %s2790_s27, 2048 }
 0x10c   : > { %2581 = vmatmul.mubr.msk.f32.gmra.mrb[4].mxu1 %vm538_vm1, %v3131_v5  ;;  %s2225_s12 = sshll.u32 %s3313_s30, 4  ;;  %s3344_s12 = int_to_ptr.vmem [resolvable:$true] %s2225_s12 }
 0x10d   : > { %2585 = vmatprep.mubr.msk.f32.mxu1 %vm538_vm1, %v579_v51  ;;  %s2785_s25 = scalar_lea.vmem %s3344_s12, 1024  ;;  %p2792_p0 = scmp.lt.s32.totalorder %s3344_s12, %s2790_s27 }
 0x10e   : > { %2544 = vmatmul.mubr.msk.f32.vlgmr.msra.gmra.mrb[8].mxu0 %vm538_vm1, %v570_v14  ;;  %p2786_p11 = scmp.ne.s32.totalorder %s3344_s12, %s2785_s25  ;;  %p2793_p1 = scmp.lt.s32.totalorder %s2791_s29, %s2785_s25 }
 0x10f   : > { %2546 = vmatprep.mubr.msk.f32.mxu0 %vm538_vm1, %v571_v15  ;;  %2556 = vmatpush3.msk.msra.mxu0 %vm611_vm3, %v860_v52 }
 0x110   : > { %2586 = vmatmul.mubr.msk.f32.vlgmr.msra.gmra.mrb[6].mxu1 %vm538_vm1, %v3077_v54  ;;  %2569 = vmatprep.subr.msk.mxu0 %vm611_vm3, %v3036_v17  ;;  %p2787_p12 = pnand %p2786_p11, %p2948_p5  ;;  %p2794_p2 = por %p2793_p1, %p2792_p0 }
 0x111   : > { %2598 = vmatpush3.msk.msra.mxu1 %vm611_vm3, %v1307_v61  ;;  %2588 = vmatprep.mubr.msk.f32.mxu1 %vm538_vm1, %v3084_v57 }
 0x112   : > { %2611 = vmatprep.subr.msk.mxu1 %vm611_vm3, %v1457_v16  ;;  %2547 = vmatmul.mubr.msk.f32.gmra.mrb[10].mxu0 %vm538_vm1, %v3086_v58  ;;  %p2788_p13 = pneg %p2787_p12 }
 0x113   : > { %2549 = vmatprep.mubr.msk.f32.mxu0 %vm538_vm1, %v3095_v60 }
 0x114   : > { %2589 = vmatmul.mubr.msk.f32.gmra.mrb[0].mxu1 %vm538_vm1, %v3093_v59  ;;  %p2795_p3 = pnand %p2794_p2, %p2788_p13 }
 0x115   : > { %2591 = vmatprep.mubr.msk.f32.mxu1 %vm538_vm1, %v3106_v62 }
 0x116   : > { %2550 = vmatmul.mubr.msk.f32.gmra.mrb[12].mxu0 %vm538_vm1, %v3108_v63 }
 0x117   : > { %2552 = vmatprep.mubr.msk.f32.mxu0 %vm538_vm1, %v3117_v1 }
 0x118   : > { %2592 = vmatmul.mubr.msk.f32.gmra.mrb[2].mxu1 %vm538_vm1, %v3115_v0 }
 0x119   : > { %2594 = vmatprep.mubr.msk.f32.mxu1 %vm538_vm1, %v3123_v3 }
 0x11a   : > { %2553 = vmatmul.mubr.msk.f32.gmra.mrb[14].mxu0 %vm538_vm1, %v3125_v4 }
 0x11b   : > { %2557 = vmatprep.mubr.msk.f32.mxu0 %vm538_vm1, %v852_v18 }
 0x11c   : > { %2595 = vmatmul.mubr.msk.f32.gmra.mrb[4].mxu1 %vm538_vm1, %v1157_v19 }
 0x11d   : > { %2599 = vmatprep.mubr.msk.f32.mxu1 %vm538_vm1, %v1299_v20 }
 0x11e   : > { %2558 = vmatmul.mubr.msk.f32.vlgmr.msra.gmra.mrb[8].mxu0 %vm538_vm1, %v1299_v20 }
 0x11f   : > { %2560 = vmatprep.mubr.msk.f32.mxu0 %vm538_vm1, %v854_v21  ;;  %2570 = vmatpush3.msk.msra.mxu0 %vm611_vm3, %v3036_v17  ;;  %v1305_v17 = vld [vmem:[#allocation2 + $0x72] sm:$0xff] }
 0x120   : > { %2600 = vmatmul.mubr.msk.f32.vlgmr.msra.gmra.mrb[6].mxu1 %vm538_vm1, %v854_v21  ;;  %2653 = vmatprep.subr.msk.mxu0 %vm611_vm3, %v1934_v11 }
 0x121   : > { %2612 = vmatpush3.msk.msra.mxu1 %vm611_vm3, %v1457_v16  ;;  %2602 = vmatprep.mubr.msk.f32.mxu1 %vm538_vm1, %v1301_v23 }
 0x122   : > { %2625 = vmatprep.subr.msk.mxu1 %vm611_vm3, %v1606_v22  ;;  %2561 = vmatmul.mubr.msk.f32.gmra.mrb[10].mxu0 %vm538_vm1, %v1301_v23 }
 0x123   : > { %2563 = vmatprep.mubr.msk.f32.mxu0 %vm538_vm1, %v856_v24 }
 0x124   : > { %2603 = vmatmul.mubr.msk.f32.gmra.mrb[0].mxu1 %vm538_vm1, %v856_v24 }
 0x125   : > { %2605 = vmatprep.mubr.msk.f32.mxu1 %vm538_vm1, %v1303_v25 }
 0x126   : > { %2564 = vmatmul.mubr.msk.f32.gmra.mrb[12].mxu0 %vm538_vm1, %v1303_v25 }
 0x127   : > { %2566 = vmatprep.mubr.msk.f32.mxu0 %vm538_vm1, %v858_v26 }
 0x128   : > { %2606 = vmatmul.mubr.msk.f32.gmra.mrb[2].mxu1 %vm538_vm1, %v858_v26 }
 0x129   : > { %2608 = vmatprep.mubr.msk.f32.mxu1 %vm538_vm1, %v1305_v17 }
 0x12a   : > { %2567 = vmatmul.mubr.msk.f32.gmra.mrb[14].mxu0 %vm538_vm1, %v1305_v17 }
 0x12b   : > { %2571 = vmatprep.mubr.msk.f32.mxu0 %vm538_vm1, %v570_v14 }
 0x12c   : > { %2609 = vmatmul.mubr.msk.f32.gmra.mrb[4].mxu1 %vm538_vm1, %v1306_v27 }
 0x12d   : > { %2613 = vmatprep.mubr.msk.f32.mxu1 %vm538_vm1, %v571_v15 }
 0x12e   : > { %2572 = vmatmul.mubr.msk.f32.vlgmr.msra.gmra.mrb[8].mxu0 %vm538_vm1, %v571_v15 }
 0x12f   : > { %2654 = vmatpush3.msk.msra.mxu0 %vm611_vm3, %v1934_v11  ;;  %v3294_v11 = vld [vmem:[%s3402_s9] ss:$0 sm:$0xff] }
 0x130   : > { %2614 = vmatmul.mubr.msk.f32.vlgmr.msra.gmra.mrb[6].mxu1 %vm538_vm1, %v3086_v58 }
 0x131   : > { %2626 = vmatpush3.msk.msra.mxu1 %vm611_vm3, %v1606_v22  ;;  %2616 = vmatprep.mubr.msk.f32.mxu1 %vm538_vm1, %v3095_v60 }
 0x132   : > { %2639 = vmatprep.subr.msk.mxu1 %vm611_vm3, %v1755_v28 }
 0x134   : > { %2617 = vmatmul.mubr.msk.f32.gmra.mrb[0].mxu1 %vm538_vm1, %v3108_v63 }
 0x135   : > { %2619 = vmatprep.mubr.msk.f32.mxu1 %vm538_vm1, %v3117_v1 }
 0x138   : > { %2620 = vmatmul.mubr.msk.f32.gmra.mrb[2].mxu1 %vm538_vm1, %v3125_v4 }
 0x139   : > { %2622 = vmatprep.mubr.msk.f32.mxu1 %vm538_vm1, %v3131_v5 }
 0x13c   : > { %2623 = vmatmul.mubr.msk.f32.gmra.mrb[4].mxu1 %vm538_vm1, %v1456_v29 }
 0x13d   : > { %2627 = vmatprep.mubr.msk.f32.mxu1 %vm538_vm1, %v3077_v54 }
 0x140   : > { %2628 = vmatmul.mubr.msk.f32.vlgmr.msra.gmra.mrb[6].mxu1 %vm538_vm1, %v3084_v57 }
 0x141   : > { %2640 = vmatpush3.msk.msra.mxu1 %vm611_vm3, %v1755_v28  ;;  %2630 = vmatprep.mubr.msk.f32.mxu1 %vm538_vm1, %v3093_v59 }
 0x144   : > { %2631 = vmatmul.mubr.msk.f32.gmra.mrb[0].mxu1 %vm538_vm1, %v3106_v62 }
 0x145   : > { %2633 = vmatprep.mubr.msk.f32.mxu1 %vm538_vm1, %v3115_v0 }
 0x148   : > { %2634 = vmatmul.mubr.msk.f32.gmra.mrb[2].mxu1 %vm538_vm1, %v3123_v3 }
 0x149   : > { %2636 = vmatprep.mubr.msk.f32.mxu1 %vm538_vm1, %v1157_v19 }
 0x14c   : > { %2637 = vmatmul.mubr.msk.f32.gmra.mrb[4].mxu1 %vm538_vm1, %v1605_v30 }
 0x14d   : > { %2641 = vmatprep.mubr.msk.f32.mxu1 %vm538_vm1, %v854_v21 }
 0x150   : > { %2642 = vmatmul.mubr.msk.f32.vlgmr.msra.gmra.mrb[6].mxu1 %vm538_vm1, %v1301_v23 }
 0x151   : > { %2644 = vmatprep.mubr.msk.f32.mxu1 %vm538_vm1, %v856_v24 }
 0x154   : > { %2645 = vmatmul.mubr.msk.f32.gmra.mrb[0].mxu1 %vm538_vm1, %v1303_v25 }
 0x155   : > { %2647 = vmatprep.mubr.msk.f32.mxu1 %vm538_vm1, %v858_v26 }
 0x158   : > { %2648 = vmatmul.mubr.msk.f32.gmra.mrb[2].mxu1 %vm538_vm1, %v1305_v17 }
 0x159   : > { %2650 = vmatprep.mubr.msk.f32.mxu1 %vm538_vm1, %v1306_v27 }
 0x15c   : > { %2651 = vmatmul.mubr.msk.f32.gmra.mrb[4].mxu1 %vm538_vm1, %v1754_v31 }
 0x16b   : > { %v2146_v6 = vpop.permute.xlu0 %2145 }
 0x16f   : > { %v2148_v37 = vpop.permute.xlu1 %2147 }
 0x173   : > { %v2152_v7 = vpop.permute.xlu1 %2151 }
 0x1f5   : > { %v2562_v10 = vpop.f32.mrb[10].mxu0 }
 0x1f6   : > { %v964_v44 = vpop.f32.mrb[11].mxu0 }
 0x1f9   : > { %v2565_v45 = vpop.f32.mrb[12].mxu0 }
 0x1fa   : > { %v974_v13 = vpop.f32.mrb[13].mxu0 }
 0x1fd   : > { %v2568_v46 = vpop.f32.mrb[14].mxu0 }
 0x1fe   : > { %v984_v47 = vpop.f32.mrb[15].mxu0 }
 0x201   : > { %v2573_v12 = vpop.f32.mrb[8].mxu0 }
 0x202   : > { %v1103_v48 = vpop.f32.mrb[9].mxu0 }
 0x223   : > { %v2643_v49 = vpop.f32.mrb[6].mxu1 }
 0x224   : > { %v2677_v51 = vadd.f32 %v2643_v49, %v2573_v12  ;;  %v1849_v52 = vpop.f32.mrb[7].mxu1 }
 0x225   : > { %v2678_v54 = vadd.f32 %v1849_v52, %v1103_v48 }
 0x226   : > { %v1904_v55 = vmul.f32 %v2677_v51, %v2385_v50 }
 0x227   : > { %v1903_v56 = vmul.f32 %v2678_v54, %v2385_v50  ;;  %v2646_v57 = vpop.f32.mrb[0].mxu1 }
 0x228   : > { %v1919_v58 = vadd.f32 %v2386_v53, %v1904_v55  ;;  %v2679_v59 = vadd.f32 %v2646_v57, %v2562_v10  ;;  %v1859_v60 = vpop.f32.mrb[1].mxu1 }
 0x229   : > { %v1918_v61 = vadd.f32 %v2386_v53, %v1903_v56  ;;  %v2680_v62 = vadd.f32 %v1859_v60, %v964_v44 }
 0x22a   : > { %v1906_v63 = vmul.f32 %v2679_v59, %v2385_v50  ;;  %v1927_v3 = vmax.f32 %v1919_v58, 0.0 }
 0x22b   : > { %v1926_v0 = vmax.f32 %v1918_v61, 0.0  ;;  %v1905_v1 = vmul.f32 %v2680_v62, %v2385_v50  ;;  %v2649_v2 = vpop.f32.mrb[2].mxu1 }
 0x22c   : > { %v1921_v4 = vadd.f32 %v2386_v53, %v1906_v63  ;;  %v2681_v5 = vadd.f32 %v2649_v2, %v2565_v45  ;;  %v1869_v14 = vpop.f32.mrb[3].mxu1  ;;  %v2170_v45 = vmax.f32 %v3245_v38, %v2148_v37  ;;  %v2172_v38 = vmax.f32 %v3250_v39, %v2152_v7 }
 0x22d   : > { %v1920_v15 = vadd.f32 %v2386_v53, %v1905_v1  ;;  %v2682_v16 = vadd.f32 %v1869_v14, %v974_v13  ;;  %2655 = vmatprep.mubr.msk.f32.mxu0 %vm538_vm1, %v1926_v0  ;;  %v2150_v13 = vpop.permute.xlu0 %2149 }
 0x22e   : > { %v1908_v18 = vmul.f32 %v2681_v5, %v2385_v50  ;;  %2656 = vmatmul.mubr.msk.f32.vlgmr.msra.gmra.mrb[16].mxu0 %vm538_vm1, %v1927_v3  ;;  %v1929_v22 = vmax.f32 %v1921_v4, 0.0  ;;  %v2179_v54 = vsel %vm2177_vm4, %v2170_v45, 0.0  ;;  %v2171_v58 = vmax.f32 %v3242_v35, %v2150_v13 }
 0x22f   : > { %v1928_v19 = vmax.f32 %v1920_v15, 0.0  ;;  %v1907_v20 = vmul.f32 %v2682_v16, %v2385_v50  ;;  %v2652_v21 = vpop.f32.mrb[4].mxu1  ;;  %v2181_v4 = vsel %vm2177_vm4, %v2172_v38, 0.0 }
 0x230   : > { %v1923_v23 = vadd.f32 %v2386_v53, %v1908_v18  ;;  %v2683_v24 = vadd.f32 %v2652_v21, %v2568_v46  ;;  %v1879_v25 = vpop.f32.mrb[5].mxu1  ;;  %v2180_v35 = vsel %vm2177_vm4, %v2171_v58, 0.0 }
 0x231   : > { %v1922_v26 = vadd.f32 %v2386_v53, %v1907_v20  ;;  %v2684_v17 = vadd.f32 %v1879_v25, %v984_v47  ;;  %2658 = vmatprep.mubr.msk.f32.mxu0 %vm538_vm1, %v1928_v19  ;;  %v2169_v47 = vmax.f32 %v3238_v34, %v2146_v6  ;;  %v2154_v55 = vpop.permute.xlu0 %2153 }
 0x232   : > { %v1910_v27 = vmul.f32 %v2683_v24, %v2385_v50  ;;  %2659 = vmatmul.mubr.msk.f32.gmra.mrb[18].mxu0 %vm538_vm1, %v1929_v22  ;;  %v1931_v30 = vmax.f32 %v1923_v23, 0.0  ;;  %v2173_v16 = vmax.f32 %v3257_v8, %v2154_v55 }
 0x233   : > { %v1930_v28 = vmax.f32 %v1922_v26, 0.0  ;;  %v1909_v29 = vmul.f32 %v2684_v17, %v2385_v50  ;;  %v2156_v50 = vpop.permute.xlu1 %2155  ;;  %v2178_v34 = vsel %vm2177_vm4, %v2169_v47, 0.0 }
 0x234   : > { %v1925_v31 = vadd.f32 %v2386_v53, %v1910_v27  ;;  %v2174_v0 = vmax.f32 %v3254_v41, %v2156_v50 }
 0x235   : > { %v1924_v32 = vadd.f32 %v2386_v53, %v1909_v29  ;;  %2661 = vmatprep.mubr.msk.f32.mxu0 %vm538_vm1, %v1930_v28  ;;  %v2158_v20 = vpop.permute.xlu0 %2157 }
 0x236   : > { %2662 = vmatmul.mubr.msk.f32.gmra.mrb[20].mxu0 %vm538_vm1, %v1931_v30  ;;  %v1933_v36 = vmax.f32 %v1925_v31, 0.0  ;;  %v2183_v8 = vsel %vm2177_vm4, %v2174_v0, 0.0  ;;  %v2182_v31 = vsel %vm2177_vm4, %v2173_v16, 0.0 }
 0x237   : > { %v1932_v33 = vmax.f32 %v1924_v32, 0.0  ;;  %v2160_v18 = vpop.permute.xlu1 %2159  ;;  %v2175_v32 = vmax.f32 %v3265_v9, %v2158_v20 }
 0x238   : > { %v2176_v27 = vmax.f32 %v3262_v43, %v2160_v18 }
 0x239   : > { %2664 = vmatprep.mubr.msk.f32.mxu0 %vm538_vm1, %v1932_v33 }
 0x23a   : > { %2665 = vmatmul.mubr.msk.f32.gmra.mrb[22].mxu0 %vm538_vm1, %v1933_v36 }
 0x301   : > { %v2657_v42 = vpop.f32.mrb[16].mxu0 }
 0x302   : > { %v2075_v10 = vmul.f32 %v2657_v42, %v2396_v40  ;;  %v2028_v44 = vpop.f32.mrb[17].mxu0 }
 0x303   : > { %v2074_v46 = vmul.f32 %v2396_v40, %v2028_v44 }
 0x304   : > { %v2090_v12 = vadd.f32 %v3294_v11, %v2075_v10  ;;  %v2184_v10 = vsel %vm2177_vm4, %v2175_v32, 0.0 }
 0x305   : > { %v2089_v48 = vadd.f32 %v3294_v11, %v2074_v46  ;;  %v2660_v49 = vpop.f32.mrb[18].mxu0 }
 0x306   : > { %v2098_v51 = vmax.f32 %v2090_v12, 0.0  ;;  %v2077_v52 = vmul.f32 %v2660_v49, %v2396_v40  ;;  %v2038_v53 = vpop.f32.mrb[19].mxu0 }
 0x307   : > { %v2097_v56 = vmax.f32 %v2089_v48, 0.0  ;;  %v2076_v57 = vmul.f32 %v2396_v40, %v2038_v53 }
 0x308   : > { %v2187_v59 = vadd.f32 %v2179_v54, %v2098_v51  ;;  %v2092_v60 = vadd.f32 %v3294_v11, %v2077_v52 }
 0x309   : > { %v2186_v61 = vadd.f32 %v2178_v34, %v2097_v56  ;;  %v2091_v62 = vadd.f32 %v3294_v11, %v2076_v57  ;;  %v2663_v63 = vpop.f32.mrb[20].mxu0 }
 0x30a   : > { %v2195_v1 = vmax.f32 %v2187_v59, 0.0  ;;  %v2100_v2 = vmax.f32 %v2092_v60, 0.0  ;;  %v2079_v39 = vmul.f32 %v2663_v63, %v2396_v40  ;;  %v2048_v3 = vpop.f32.mrb[21].mxu0 }
 0x30b   : > { %v2194_v5 = vmax.f32 %v2186_v61, 0.0  ;;  %v2099_v14 = vmax.f32 %v2091_v62, 0.0  ;;  %v2078_v15 = vmul.f32 %v2396_v40, %v2048_v3 }
 0x30c   : > { %2204 = vst.msk [vmem:[%s3313_s30 + $0x8] sm:$0xff] %vm2202_vm5, %v2195_v1  ;;  %v2189_v41 = vadd.f32 %v2181_v4, %v2100_v2  ;;  %v2094_v19 = vadd.f32 %v3294_v11, %v2079_v39 }
 0x30d   : > { %2203 = vst.msk [vmem:[%s3313_s30] sm:$0xff] %vm2202_vm5, %v2194_v5  ;;  %v2188_v21 = vadd.f32 %v2180_v35, %v2099_v14  ;;  %v2093_v22 = vadd.f32 %v3294_v11, %v2078_v15  ;;  %v2666_v23 = vpop.f32.mrb[22].mxu0 }
 0x30e   : > { %v2197_v24 = vmax.f32 %v2189_v41, 0.0  ;;  %v2102_v25 = vmax.f32 %v2094_v19, 0.0  ;;  %v2081_v26 = vmul.f32 %v2666_v23, %v2396_v40  ;;  %v2058_v17 = vpop.f32.mrb[23].mxu0 }
 0x30f   : > { %v2196_v28 = vmax.f32 %v2188_v21, 0.0  ;;  %v2101_v29 = vmax.f32 %v2093_v22, 0.0  ;;  %v2080_v30 = vmul.f32 %v2396_v40, %v2058_v17  ;;  %v2185_v40 = vsel %vm2177_vm4, %v2176_v27, 0.0 }
 0x310   : > { %2206 = vst.msk [vmem:[%s3313_s30 + $0x18] sm:$0xff] %vm2202_vm5, %v2197_v24  ;;  %v2191_v33 = vadd.f32 %v2183_v8, %v2102_v25  ;;  %v2096_v36 = vadd.f32 %v3294_v11, %v2081_v26 }
 0x311   : > { %2205 = vst.msk [vmem:[%s3313_s30 + $0x10] sm:$0xff] %vm2202_vm5, %v2196_v28  ;;  %v2190_v37 = vadd.f32 %v2182_v31, %v2101_v29  ;;  %v2095_v43 = vadd.f32 %v3294_v11, %v2080_v30 }
 0x312   : > { %v2199_v6 = vmax.f32 %v2191_v33, 0.0  ;;  %v2104_v7 = vmax.f32 %v2096_v36, 0.0 }
 0x313   : > { %v2198_v42 = vmax.f32 %v2190_v37, 0.0  ;;  %v2103_v9 = vmax.f32 %v2095_v43, 0.0 }
 0x314   : > { %2208 = vst.msk [vmem:[%s3313_s30 + $0x28] sm:$0xff] %vm2202_vm5, %v2199_v6  ;;  %v2193_v44 = vadd.f32 %v2185_v40, %v2104_v7 }
 0x315   : > { %2207 = vst.msk [vmem:[%s3313_s30 + $0x20] sm:$0xff] %vm2202_vm5, %v2198_v42  ;;  %v2192_v11 = vadd.f32 %v2184_v10, %v2103_v9 }
 0x316   : > { %v2201_v45 = vmax.f32 %v2193_v44, 0.0 }
 0x317   : > { %v2200_v13 = vmax.f32 %v2192_v11, 0.0 }
 0x318   : > { %2210 = vst.msk [vmem:[%s3313_s30 + $0x38] sm:$0xff] %vm2202_vm5, %v2201_v45 }
 0x319   : > { %2209 = vst.msk [vmem:[%s3313_s30 + $0x30] sm:$0xff] %vm2202_vm5, %v2200_v13 }
 0x31a   : > { %2798 = shalt.err (!%p2795_p3)
}
 0x31b   : > { %s2799_s28 = scalar_lea.hbm %s3342_s21, 1024  ;;  %s2803_s18 = scalar_lea.hbm %s3403_s10, 2048 }
 0x31c   : > { %p2800_p4 = scmp.ne.s32.totalorder %s3342_s21, %s2799_s28  ;;  %p2804_p9 = scmp.lt.u32.totalorder %s3342_s21, %s3403_s10 }
 0x31d   : > { %p2805_p10 = scmp.lt.u32.totalorder %s2803_s18, %s2799_s28  ;;  %p2807_p12 = scmp.lt.u32.totalorder %s2799_s28, %s3342_s21 }
 0x31e   : > { %p2801_p7 = pnand %p2800_p4, %p2948_p5 }
 0x31f   : > { %p2806_p11 = por %p2805_p10, %p2804_p9 }
 0x320   : > { %p2802_p8 = pneg %p2801_p7 }
 0x321   : > { %p2808_p13 = por %p2807_p12, %p2806_p11 }
 0x323   : > { %p2809_p0 = pnand %p2808_p13, %p2802_p8 }
 0x325   : > { %2812 = shalt.err (!%p2809_p0)
}
 0x326   : > { %s2853_s25 = smov 128   ;;  %s2854_s27 = smov 8  }
 0x327   : > { %2741 = dma.vmem_to_hbm [thread:$0]  (%p2948_p5), %s3344_s12, 1024, %s3342_s21, %s3352_s17, %s2853_s25, %s2853_s25, %s2854_s27  }
 0x328 PF: > { %p2747_p1 = scmp.ge.s32.totalorder %s2847_s16, 2  ;;  %s2240_s29 = sand.u32 1, %s2835_s13  }
 0x329   : > { %s2241_s28 = scalar_lea.sflag [#allocation4], %s2240_s29 }
 0x32a   : > { %p2744_p2 = pnand %p2747_p1, %p2952_p6 }
 0x32c   : > { %2830 = dma.done.wait (!%p2744_p2), %s2241_s28, 1024  }
 0x32d   : > { %2832 = vsyncadd (!%p2744_p2), %s2241_s28, 4294966272  ;;  %p20_p3 = scmp.ge.s32.totalorder %s2935_s19, 4   ;;  %s3406_s13 = smov %s2839_s14 }
 0x32e   : > { %s3407_s14 = smov %s2843_s15  ;;  %s3408_s15 = smov %s2946_s22 }
 0x32f   : > { %s3409_s16 = smov %s2935_s19  ;;  %22 = sbr.rel (!%p20_p3) target bundleno = 3 (0x3), region = 97 }
 0x336   :  { %2246 = vsyncpa [#allocation4], 1 }
 0x337   :  { %2248 = vsyncpa [#allocation4 + $0x1], 1 }

</bundles_post_ra>
